<compile_context>
chip_gen: v7x
topology: tpu7x:2x2x1
jax: 0.10.0
libtpu: 0.0.40
codegen_flags: <defaults>
</compile_context>

<pallas_src>
import functools

import jax
import jax.numpy as jnp
from jax.experimental import pallas as pl
from jax.experimental.pallas import tpu as pltpu

_LANE = 128
_TARGET_BLOCK_BYTES = 4 << 20  # ~4 MiB per block; in+out double-buffered ~= 16 MiB


def _sublane_multiple(dtype):
    itemsize = jnp.dtype(dtype).itemsize
    if itemsize >= 4:
        return 8
    if itemsize == 2:
        return 16
    return 32


def _bf16_math_ok():
    """bf16 VPU/EUP exists on v6e/v7x; older chips lower bf16 math via f32 + converts."""
    try:
        kind = jax.devices()[0].device_kind.lower()
    except Exception:
        return False
    return any(tag in kind for tag in ("v6", "v7", "7x"))


def _esh_kernel(x_ref, o_ref, *, upcast_bf16):
    x = x_ref[...]
    if x.dtype == jnp.float32 or (x.dtype == jnp.bfloat16 and not upcast_bf16):
        xc = x
    else:
        xc = x.astype(jnp.float32)
    half = jnp.asarray(0.5, xc.dtype)
    # sigmoid(x) = 0.5 * (1 + tanh(0.5*x))  ->  2 EUP tanh ops instead of exp+recip+tanh.
    sig = half + half * jnp.tanh(half * xc)
    o_ref[...] = (xc * jnp.tanh(sig)).astype(o_ref.dtype)


def _choose_blocks(L, H, W, itemsize, sub):
    """Pick a (bl, bh, bw) block for the (L, H, W) view, targeting ~4 MiB per block."""
    # Lane (last) dim: keep full unless it is a huge multiple of 128.
    if W % _LANE == 0 and W * itemsize * sub > _TARGET_BLOCK_BYTES:
        bw = max(_LANE, (_TARGET_BLOCK_BYTES // (sub * _LANE * itemsize)) * _LANE)
        bw = min(bw, W)
    else:
        bw = W  # full extent (legal even when not a multiple of 128)
    # Sublane (second-last) dim: full if it fits, else a multiple of the packing factor.
    row_bytes = bw * itemsize
    bh_budget = max(1, _TARGET_BLOCK_BYTES // row_bytes)
    if bh_budget >= H:
        bh = H
    else:
        bh = min(H, max(sub, (bh_budget // sub) * sub))
    # Leading dim: fill the budget; bias toward an even grid-step count (v7x megacore).
    slab_bytes = bh * bw * itemsize
    bl = max(1, min(L, _TARGET_BLOCK_BYTES // slab_bytes))
    steps = pl.cdiv(L, bl)
    if steps > 1 and steps % 2 == 1:
        bl = max(1, -(-L // (steps + 1)))
    return bl, bh, bw


def esh(x):
    """Apply esh(x) = x * tanh(sigmoid(x)) elementwise via a Pallas TPU kernel."""
    if x.size == 0:
        return x
    orig_shape = x.shape
    dtype = x.dtype

    if x.ndim == 0:
        # Scalar: not worth a kernel launch.
        return (x * jnp.tanh(jax.nn.sigmoid(x))).astype(dtype)

    # Present the array as (L, H, W) keeping the original trailing dims: only leading
    # dims are collapsed (layout-free), so XLA never inserts a relayout copy.
    if x.ndim == 1:
        H, W = 1, x.shape[0]
    else:
        H, W = x.shape[-2], x.shape[-1]
    L = x.size // (H * W)
    x3 = x.reshape(L, H, W)

    itemsize = jnp.dtype(dtype).itemsize
    sub = _sublane_multiple(dtype)
    bl, bh, bw = _choose_blocks(L, H, W, itemsize, sub)
    grid = (pl.cdiv(L, bl), pl.cdiv(H, bh), pl.cdiv(W, bw))

    n = x.size
    cost = pl.CostEstimate(
        flops=4 * n,            # muls/adds around the two tanh calls
        transcendentals=2 * n,  # two tanh per element
        bytes_accessed=2 * n * itemsize,
    )

    kernel = functools.partial(_esh_kernel, upcast_bf16=not _bf16_math_ok())

    out3 = pl.pallas_call(
        kernel,
        out_shape=jax.ShapeDtypeStruct((L, H, W), dtype),
        grid_spec=pltpu.PrefetchScalarGridSpec(
            num_scalar_prefetch=0,
            grid=grid,
            in_specs=[pl.BlockSpec((bl, bh, bw), lambda i, j, k: (i, j, k))],
            out_specs=pl.BlockSpec((bl, bh, bw), lambda i, j, k: (i, j, k)),
        ),
        compiler_params=pltpu.CompilerParams(
            dimension_semantics=("parallel", "parallel", "parallel"),
            # ~16 MiB of block buffering; raise v5e's 16 MiB scoped default, stay well
            # under v7x's 64 MiB/TC physical VMEM.
            vmem_limit_bytes=32 << 20,
        ),
        cost_estimate=cost,
    )(x3)

    return out3.reshape(orig_shape)


class Activation:
    """JAX/Pallas equivalent of the PyTorch Activation module (default act='esh')."""

    def __init__(self, act="esh"):
        print(act)
        # TODO(synk): other branches (relu/gelu/selu/leakyrelu/elu/mish/prelu/silu) are
        # trivial elementwise ops; only the module default act='esh' is implemented.
        assert act == "esh", "only 'esh' implemented in this synthetic kernel"
        self.act = esh

    def __call__(self, x):
        # NOTE: when this sits between convolutions, fusing into the producer's epilogue
        # (or leaving it to XLA fusion) removes the extra HBM round trip entirely.
        return self.act(x)


def _ref_esh_f32(x):
    xf = x.astype(jnp.float32)
    return xf * jnp.tanh(jax.nn.sigmoid(xf))


if __name__ == "__main__":
    key = jax.random.PRNGKey(0)
    k0, k1, k2, k3, k4 = jax.random.split(key, 5)

    act = Activation("esh")

    # UNet-like NCHW input (non-lane-aligned trailing dims: full-extent trailing block).
    x = jax.random.normal(k0, (2, 4, 16, 16), dtype=jnp.float32)
    y = jax.block_until_ready(act(x))
    assert y.shape == x.shape and y.dtype == x.dtype
    assert jnp.allclose(y, _ref_esh_f32(x), atol=1e-5, rtol=1e-5)

    # Lane-aligned last dim with a multi-step (ragged, even) leading grid.
    x2 = jax.random.normal(k1, (3, 4, 256, 512), dtype=jnp.float32)
    y2 = jax.block_until_ready(act(x2))
    assert jnp.allclose(y2, _ref_esh_f32(x2), atol=1e-5, rtol=1e-5)

    # Fully irregular shape: no pad, no relayout (trailing dims kept whole).
    x3 = jax.random.normal(k2, (3, 5, 7, 11), dtype=jnp.float32)
    y3 = jax.block_until_ready(act(x3))
    assert jnp.allclose(y3, _ref_esh_f32(x3), atol=1e-5, rtol=1e-5)

    # 1-D input.
    x4 = jax.random.normal(k3, (1000,), dtype=jnp.float32)
    y4 = jax.block_until_ready(act(x4))
    assert jnp.allclose(y4, _ref_esh_f32(x4), atol=1e-5, rtol=1e-5)

    # bf16 input (bf16 EUP math only on v6e/v7x; f32 math elsewhere).
    x5 = jax.random.normal(k4, (2, 4, 16, 16), dtype=jnp.bfloat16)
    y5 = jax.block_until_ready(act(x5))
    assert y5.shape == x5.shape and y5.dtype == jnp.bfloat16
    assert jnp.allclose(y5.astype(jnp.float32), _ref_esh_f32(x5), atol=5e-2, rtol=5e-2)

    print("KERNEL_OK")
</pallas_src>

<mosaic_0001>
module attributes {stable_mosaic.version = 11 : i64} {
  func.func @_esh_kernel(%arg0: i32, %arg1: i32, %arg2: i32, %arg3: memref<8x16x16xf32, #tpu.memory_space<vmem>>, %arg4: memref<8x16x16xf32, #tpu.memory_space<vmem>>) attributes {dimension_semantics = [#tpu.dimension_semantics<parallel>, #tpu.dimension_semantics<parallel>, #tpu.dimension_semantics<parallel>], iteration_bounds = array<i64: 1, 1, 1>, scalar_prefetch = 0 : i64, scratch_operands = 0 : i64, tpu.core_type = #tpu.core_type<tc>, window_params = [{transform_indices = @transform_0, window_bounds = array<i64: 8, 16, 16>}, {transform_indices = @transform_1, window_bounds = array<i64: 8, 16, 16>}]} {
    %c0 = arith.constant 0 : index
    %c0_0 = arith.constant 0 : index
    %c0_1 = arith.constant 0 : index
    %0 = vector.load %arg3[%c0, %c0_0, %c0_1] : memref<8x16x16xf32, #tpu.memory_space<vmem>>, vector<8x16x16xf32>
    %cst = arith.constant 5.000000e-01 : f32
    %1 = vector.broadcast %cst : f32 to vector<8x16x16xf32>
    %2 = arith.mulf %1, %0 : vector<8x16x16xf32>
    %3 = math.tanh %2 : vector<8x16x16xf32>
    %cst_2 = arith.constant 5.000000e-01 : f32
    %4 = vector.broadcast %cst_2 : f32 to vector<8x16x16xf32>
    %5 = arith.mulf %4, %3 : vector<8x16x16xf32>
    %cst_3 = arith.constant 5.000000e-01 : f32
    %6 = vector.broadcast %cst_3 : f32 to vector<8x16x16xf32>
    %7 = arith.addf %6, %5 : vector<8x16x16xf32>
    %8 = math.tanh %7 : vector<8x16x16xf32>
    %9 = arith.mulf %0, %8 : vector<8x16x16xf32>
    %c0_4 = arith.constant 0 : index
    %c0_5 = arith.constant 0 : index
    %c0_6 = arith.constant 0 : index
    %10 = vector.load %arg4[%c0_4, %c0_5, %c0_6] : memref<8x16x16xf32, #tpu.memory_space<vmem>>, vector<8x16x16xf32>
    tpu.vector_store %arg4[%c0_4, %c0_5, %c0_6], %9 {strides = array<i32>} : memref<8x16x16xf32, #tpu.memory_space<vmem>>, vector<8x16x16xf32>,
    return
  }
  func.func @transform_0(%arg0: i32, %arg1: i32, %arg2: i32) -> (i32, i32, i32) {
    %c0_i32 = arith.constant 0 : i32
    return %arg0, %arg1, %arg2 : i32, i32, i32
  }
  func.func @transform_1(%arg0: i32, %arg1: i32, %arg2: i32) -> (i32, i32, i32) {
    %c0_i32 = arith.constant 0 : i32
    return %arg0, %arg1, %arg2 : i32, i32, i32
  }
}

</mosaic_0001>

<bundles_post_ra>
// kernel: tpu_custom_call.1
= control target key start
LH: loop header
LB: loop body
LE: loop exit
PB: predicated region body
PF: predicated region fallthrough
CT: control target
= control target key end

     0   :  { %6 = vsyncpa [#allocation3], 0  ;;  %s409_s0 = inlined_call_operand.hbm [shape: f32[8,16,16], index: 0, kind: input, shape index: {}]   ;;  %s410_s1 = inlined_call_operand.hbm [shape: f32[8,16,16], index: 1, kind: output, shape index: {}]  }
   0x1   :  { %7 = vsyncpa [#allocation4], 0  ;;  %s285_s6 = smov [#allocation2]   ;;  %s237_s10 = scalar_lea.hbm %s409_s0, 2048 }
   0x2   :  { %s13_s7 = sshll.u32 %s285_s6, 4  ;;  %p238_p0 = scmp.ne.s32.totalorder %s409_s0, %s237_s10  ;;  %s14_s7 = int_to_ptr.vmem [resolvable:$true] %s13_s7 }
   0x3   :  { %p241_p1 = scmp.lt.u32.totalorder %s237_s10, %s409_s0 }
   0x5   :  { %p243_p2 = pnand %p241_p1, %p238_p0 }
   0x7   :  { %246 = shalt.err (!%p243_p2)
}
   0x8   :  { %s247_s15 = scalar_lea.vmem %s14_s7, 2048  ;;  %p252_p4 = scmp.lt.s32.totalorder %s14_s7, %s14_s7 }
   0x9   :  { %p248_p3 = scmp.ne.s32.totalorder %s14_s7, %s247_s15  ;;  %p253_p5 = scmp.lt.s32.totalorder %s247_s15, %s247_s15 }
   0xb   :  { %p254_p6 = por %p253_p5, %p252_p4 }
   0xd   :  { %p255_p7 = pnand %p254_p6, %p248_p3 }
   0xf   :  { %258 = shalt.err (!%p255_p7)
}
  0x10   :  { %s286_s16 = smov 128   ;;  %s287_s17 = smov 8  }
  0x11   :  { %19 = dma.hbm_to_vmem [thread:$0]  %s409_s0, 2048, %s14_s7, [#allocation3], %s286_s16, %s286_s16, %s287_s17  }
  0x12   :  { %281 = dma.done.wait [#allocation3], 2048  }
  0x13   :  { %282 = vsyncadd [#allocation3], 4294965248  ;;  %v314_v0 = vld [vmem:[#allocation2] sm:$0xff]  ;;  %v316_v1 = vld [vmem:[#allocation2 + $0x8] sm:$0xff]  ;;  %vm135_vm0 = vcmask 130048   ;;  %s288_s0 = smov [#allocation5]  }
  0x14   :  { %v318_v2 = vld [vmem:[#allocation2 + $0x10] sm:$0xff]  ;;  %v39_v3 = vmul.f32 0.5, %v314_v0  ;;  %v40_v4 = vmul.f32 0.5, %v316_v1  ;;  %v323_v6 = vld [vmem:[#allocation2 + $0x18] sm:$0xff]  ;;  %v325_v7 = vld [vmem:[#allocation2 + $0x20] sm:$0xff]  ;;  %s157_s20 = sshll.u32 %s288_s0, 4  ;;  %s158_s20 = int_to_ptr.vmem [resolvable:$true] %s157_s20 }
  0x15   :  { %v41_v5 = vmul.f32 0.5, %v318_v2  ;;  %v327_v8 = vld [vmem:[#allocation2 + $0x28] sm:$0xff]  ;;  %v42_v9 = vmul.f32 0.5, %v323_v6  ;;  %v330_v10 = vld [vmem:[#allocation2 + $0x30] sm:$0xff]  ;;  %v43_v11 = vmul.f32 0.5, %v325_v7  ;;  %v333_v12 = vld [vmem:[#allocation2 + $0x38] sm:$0xff]  ;;  %p264_p9 = scmp.lt.s32.totalorder %s158_s20, %s158_s20 }
  0x16   :  { %173 = vtanh.f32 %v39_v3  ;;  %v44_v13 = vmul.f32 0.5, %v327_v8  ;;  %v336_v14 = vld [vmem:[#allocation2 + $0x40] sm:$0xff]  ;;  %v45_v15 = vmul.f32 0.5, %v330_v10  ;;  %v339_v16 = vld [vmem:[#allocation2 + $0x48] sm:$0xff]  ;;  %v46_v17 = vmul.f32 0.5, %v333_v12  ;;  %v342_v18 = vld [vmem:[#allocation2 + $0x50] sm:$0xff] }
  0x17   :  { %175 = vtanh.f32 %v40_v4  ;;  %v47_v19 = vmul.f32 0.5, %v336_v14  ;;  %v345_v20 = vld [vmem:[#allocation2 + $0x58] sm:$0xff]  ;;  %v48_v21 = vmul.f32 0.5, %v339_v16  ;;  %v348_v22 = vld [vmem:[#allocation2 + $0x60] sm:$0xff]  ;;  %v49_v23 = vmul.f32 0.5, %v342_v18  ;;  %v351_v24 = vld [vmem:[#allocation2 + $0x68] sm:$0xff] }
  0x18   :  { %177 = vtanh.f32 %v41_v5  ;;  %v50_v25 = vmul.f32 0.5, %v345_v20  ;;  %v354_v26 = vld [vmem:[#allocation2 + $0x70] sm:$0xff]  ;;  %v51_v27 = vmul.f32 0.5, %v348_v22  ;;  %v52_v28 = vmul.f32 0.5, %v351_v24  ;;  %s259_s21 = scalar_lea.vmem %s158_s20, 2048 }
  0x19   :  { %179 = vtanh.f32 %v42_v9  ;;  %v53_v30 = vmul.f32 0.5, %v354_v26  ;;  %p260_p8 = scmp.ne.s32.totalorder %s158_s20, %s259_s21  ;;  %p265_p10 = scmp.lt.s32.totalorder %s259_s21, %s259_s21 }
  0x1a   :  { %181 = vtanh.f32 %v43_v11  ;;  %v359_v11 = vld [vmem:[#allocation2 + $0x78] sm:$0xff] }
  0x1b   :  { %183 = vtanh.f32 %v44_v13  ;;  %p266_p11 = por %p265_p10, %p264_p9 }
  0x1c   :  { %185 = vtanh.f32 %v45_v15 }
  0x1d   :  { %187 = vtanh.f32 %v46_v17  ;;  %p267_p12 = pnand %p266_p11, %p260_p8 }
  0x1e   :  { %189 = vtanh.f32 %v47_v19 }
  0x1f   :  { %191 = vtanh.f32 %v48_v21 }
  0x20   :  { %v174_v29 = vpop.eup %173  ;;  %193 = vtanh.f32 %v49_v23 }
  0x21   :  { %v176_v31 = vpop.eup %175  ;;  %v71_v32 = vmul.f32 0.5, %v174_v29  ;;  %195 = vtanh.f32 %v50_v25  ;;  %v54_v29 = vmul.f32 0.5, %v359_v11 }
  0x22   :  { %v178_v33 = vpop.eup %177  ;;  %v72_v34 = vmul.f32 0.5, %v176_v31  ;;  %197 = vtanh.f32 %v51_v27 }
  0x23   :  { %v180_v35 = vpop.eup %179  ;;  %v87_v36 = vadd.f32 0.5, %v71_v32  ;;  %v73_v37 = vmul.f32 0.5, %v178_v33  ;;  %199 = vtanh.f32 %v52_v28 }
  0x24   :  { %v182_v38 = vpop.eup %181  ;;  %v88_v39 = vadd.f32 0.5, %v72_v34  ;;  %v74_v40 = vmul.f32 0.5, %v180_v35  ;;  %201 = vtanh.f32 %v53_v30 }
  0x25   :  { %v184_v41 = vpop.eup %183  ;;  %203 = vtanh.f32 %v87_v36  ;;  %v89_v42 = vadd.f32 0.5, %v73_v37  ;;  %v75_v43 = vmul.f32 0.5, %v182_v38 }
  0x26   :  { %v186_v44 = vpop.eup %185  ;;  %205 = vtanh.f32 %v88_v39  ;;  %v90_v45 = vadd.f32 0.5, %v74_v40  ;;  %v76_v46 = vmul.f32 0.5, %v184_v41 }
  0x27   :  { %v188_v47 = vpop.eup %187  ;;  %207 = vtanh.f32 %v89_v42  ;;  %v91_v48 = vadd.f32 0.5, %v75_v43  ;;  %v77_v49 = vmul.f32 0.5, %v186_v44 }
  0x28   :  { %v190_v50 = vpop.eup %189  ;;  %209 = vtanh.f32 %v90_v45  ;;  %v92_v51 = vadd.f32 0.5, %v76_v46  ;;  %v78_v52 = vmul.f32 0.5, %v188_v47 }
  0x29   :  { %v192_v53 = vpop.eup %191  ;;  %211 = vtanh.f32 %v91_v48  ;;  %v93_v54 = vadd.f32 0.5, %v77_v49  ;;  %v79_v55 = vmul.f32 0.5, %v190_v50 }
  0x2a   :  { %v194_v56 = vpop.eup %193  ;;  %213 = vtanh.f32 %v92_v51  ;;  %v94_v57 = vadd.f32 0.5, %v78_v52  ;;  %v80_v58 = vmul.f32 0.5, %v192_v53 }
  0x2b   :  { %v196_v59 = vpop.eup %195  ;;  %215 = vtanh.f32 %v93_v54  ;;  %v95_v60 = vadd.f32 0.5, %v79_v55  ;;  %v81_v61 = vmul.f32 0.5, %v194_v56 }
  0x2c   :  { %v198_v62 = vpop.eup %197  ;;  %217 = vtanh.f32 %v94_v57  ;;  %v96_v63 = vadd.f32 0.5, %v80_v58  ;;  %v82_v3 = vmul.f32 0.5, %v196_v59 }
  0x2d   :  { %v200_v4 = vpop.eup %199  ;;  %219 = vtanh.f32 %v95_v60  ;;  %v97_v5 = vadd.f32 0.5, %v81_v61  ;;  %v83_v9 = vmul.f32 0.5, %v198_v62 }
  0x2e   :  { %v202_v13 = vpop.eup %201  ;;  %221 = vtanh.f32 %v96_v63  ;;  %v98_v15 = vadd.f32 0.5, %v82_v3  ;;  %v84_v17 = vmul.f32 0.5, %v200_v4 }
  0x2f   :  { %v204_v19 = vpop.eup %203  ;;  %223 = vtanh.f32 %v97_v5  ;;  %v99_v21 = vadd.f32 0.5, %v83_v9  ;;  %v85_v23 = vmul.f32 0.5, %v202_v13 }
  0x30   :  { %v206_v25 = vpop.eup %205  ;;  %v119_v27 = vmul.f32 %v204_v19, %v314_v0  ;;  %225 = vtanh.f32 %v98_v15  ;;  %v100_v28 = vadd.f32 0.5, %v84_v17 }
  0x31   :  { %v208_v30 = vpop.eup %207  ;;  %v120_v31 = vmul.f32 %v206_v25, %v316_v1  ;;  %227 = vtanh.f32 %v99_v21  ;;  %v101_v32 = vadd.f32 0.5, %v85_v23 }
  0x32   :  { %v210_v33 = vpop.eup %209  ;;  %136 = vst.msk [vmem:[#allocation5] sm:$0xff] %vm135_vm0, %v119_v27  ;;  %v121_v34 = vmul.f32 %v208_v30, %v318_v2  ;;  %229 = vtanh.f32 %v100_v28 }
  0x33   :  { %v212_v35 = vpop.eup %211  ;;  %137 = vst.msk [vmem:[#allocation5 + $0x8] sm:$0xff] %vm135_vm0, %v120_v31  ;;  %v122_v0 = vmul.f32 %v210_v33, %v323_v6  ;;  %231 = vtanh.f32 %v101_v32 }
  0x34   :  { %v214_v36 = vpop.eup %213  ;;  %138 = vst.msk [vmem:[#allocation5 + $0x10] sm:$0xff] %vm135_vm0, %v121_v34  ;;  %v123_v37 = vmul.f32 %v212_v35, %v325_v7  ;;  %233 = vtanh.f32 %v54_v29 }
  0x35   :  { %v216_v1 = vpop.eup %215  ;;  %139 = vst.msk [vmem:[#allocation5 + $0x18] sm:$0xff] %vm135_vm0, %v122_v0  ;;  %v124_v38 = vmul.f32 %v214_v36, %v327_v8 }
  0x36   :  { %v218_v39 = vpop.eup %217  ;;  %140 = vst.msk [vmem:[#allocation5 + $0x20] sm:$0xff] %vm135_vm0, %v123_v37  ;;  %v125_v2 = vmul.f32 %v216_v1, %v330_v10 }
  0x37   :  { %v220_v40 = vpop.eup %219  ;;  %141 = vst.msk [vmem:[#allocation5 + $0x28] sm:$0xff] %vm135_vm0, %v124_v38  ;;  %v126_v6 = vmul.f32 %v218_v39, %v333_v12 }
  0x38   :  { %v222_v41 = vpop.eup %221  ;;  %142 = vst.msk [vmem:[#allocation5 + $0x30] sm:$0xff] %vm135_vm0, %v125_v2  ;;  %v127_v7 = vmul.f32 %v220_v40, %v336_v14 }
  0x39   :  { %v224_v42 = vpop.eup %223  ;;  %143 = vst.msk [vmem:[#allocation5 + $0x38] sm:$0xff] %vm135_vm0, %v126_v6  ;;  %v128_v8 = vmul.f32 %v222_v41, %v339_v16 }
  0x3a   :  { %v226_v43 = vpop.eup %225  ;;  %144 = vst.msk [vmem:[#allocation5 + $0x40] sm:$0xff] %vm135_vm0, %v127_v7  ;;  %v129_v10 = vmul.f32 %v224_v42, %v342_v18 }
  0x3b   :  { %v228_v44 = vpop.eup %227  ;;  %145 = vst.msk [vmem:[#allocation5 + $0x48] sm:$0xff] %vm135_vm0, %v128_v8  ;;  %v130_v12 = vmul.f32 %v226_v43, %v345_v20 }
  0x3c   :  { %v230_v45 = vpop.eup %229  ;;  %146 = vst.msk [vmem:[#allocation5 + $0x50] sm:$0xff] %vm135_vm0, %v129_v10  ;;  %v131_v14 = vmul.f32 %v228_v44, %v348_v22 }
  0x3d   :  { %v232_v46 = vpop.eup %231  ;;  %147 = vst.msk [vmem:[#allocation5 + $0x58] sm:$0xff] %vm135_vm0, %v130_v12  ;;  %v132_v16 = vmul.f32 %v230_v45, %v351_v24 }
  0x3e   :  { %v234_v47 = vpop.eup %233  ;;  %148 = vst.msk [vmem:[#allocation5 + $0x60] sm:$0xff] %vm135_vm0, %v131_v14  ;;  %v133_v18 = vmul.f32 %v232_v46, %v354_v26 }
  0x3f   :  { %149 = vst.msk [vmem:[#allocation5 + $0x68] sm:$0xff] %vm135_vm0, %v132_v16  ;;  %v86_v48 = vmul.f32 0.5, %v234_v47 }
  0x40   :  { %150 = vst.msk [vmem:[#allocation5 + $0x70] sm:$0xff] %vm135_vm0, %v133_v18 }
  0x41   :  { %v102_v20 = vadd.f32 0.5, %v86_v48 }
  0x43   :  { %235 = vtanh.f32 %v102_v20 }
  0x4d   :  { %v236_v22 = vpop.eup %235 }
  0x4e   :  { %v134_v49 = vmul.f32 %v236_v22, %v359_v11 }
  0x50   :  { %151 = vst.msk [vmem:[#allocation5 + $0x78] sm:$0xff] %vm135_vm0, %v134_v49 }
  0x51   :  { %270 = shalt.err (!%p267_p12)
}
  0x52   :  { %s271_s24 = scalar_lea.hbm %s410_s1, 2048 }
  0x53   :  { %p272_p13 = scmp.ne.s32.totalorder %s410_s1, %s271_s24  ;;  %p275_p0 = scmp.lt.u32.totalorder %s271_s24, %s410_s1 }
  0x55   :  { %p277_p1 = pnand %p275_p0, %p272_p13 }
  0x57   :  { %280 = shalt.err (!%p277_p1)
}
  0x58   :  { %163 = dma.vmem_to_hbm [thread:$0]  %s158_s20, 2048, %s410_s1, [#allocation4], %s286_s16, %s286_s16, %s287_s17  }
  0x59   :  { %283 = dma.done.wait [#allocation4], 2048  }
  0x5a   :  { %284 = vsyncadd [#allocation4], 4294965248 }
  0x5b   :  { %167 = vsyncpa [#allocation3], 1 }
  0x5c   :  { %168 = vsyncpa [#allocation4], 1 }

</bundles_post_ra>
